<compile_context>
chip_gen: v5e
topology: v5e:2x2
jax: 0.10.0
libtpu: 0.0.40
codegen_flags: <defaults>
</compile_context>

<pallas_src>
import math
import functools

import jax
import jax.numpy as jnp
from jax.experimental import pallas as pl
from jax.experimental.pallas import tpu as pltpu


def make_pos_encoding(dim_model: int, max_len: int, dtype=jnp.float32):
    """Replicates the buffer built in PositionalEncoding.__init__.

    Returns (max_len, dim_model) in the activation dtype; the torch buffer is
    this array with an extra singleton batch dim ((max_len, 1, dim_model)).
    Build it once ("register_buffer") so the forward pass does no per-call
    slice/cast work on it.
    """
    positions = jnp.arange(max_len, dtype=jnp.float32)[:, None]          # (L, 1)
    division_term = jnp.exp(
        jnp.arange(0, dim_model, 2, dtype=jnp.float32)
        * (-math.log(10000.0) / dim_model)
    )                                                                    # (D/2,)
    pe = jnp.zeros((max_len, dim_model), dtype=jnp.float32)
    pe = pe.at[:, 0::2].set(jnp.sin(positions * division_term))
    pe = pe.at[:, 1::2].set(jnp.cos(positions * division_term))
    return pe.astype(dtype)                                              # (L, D)


# ---------------------------------------------------------------------------
# Kernels
# ---------------------------------------------------------------------------

def _pe_add_kernel(x_ref, pe_ref, o_ref, *, batch_tile):
    # x_ref/o_ref: (ts, tb*D) slab; pe_ref: (ts, D) slab (broadcast over batch).
    pe = pe_ref[...].astype(x_ref.dtype)
    if batch_tile > 1:
        pe = jnp.tile(pe, (1, batch_tile))       # lane-replicate over batches
    o_ref[...] = x_ref[...] + pe                 # VPU add


def _pe_add_dropout_kernel(seed_ref, x_ref, pe_ref, o_ref, *,
                           batch_tile, dropout_p):
    pe = pe_ref[...].astype(x_ref.dtype)
    if batch_tile > 1:
        pe = jnp.tile(pe, (1, batch_tile))
    y = x_ref[...] + pe

    # Inverted dropout: keep decision is a single integer compare on the raw
    # uint32 PRNG bits against a static threshold; the 1/(1-p) scale is folded
    # into one multiply inside the select.  Unique seed per grid step.
    pltpu.prng_seed(seed_ref[0]
                    + pl.program_id(0) * pl.num_programs(1)
                    + pl.program_id(1))
    bits = pltpu.bitcast(pltpu.prng_random_bits(y.shape), jnp.uint32)
    thr = jnp.uint32(min(int(dropout_p * (1 << 32)), (1 << 32) - 1))
    scale = jnp.asarray(1.0 / (1.0 - dropout_p), dtype=y.dtype)
    o_ref[...] = jnp.where(bits >= thr, y * scale, jnp.zeros_like(y))


# ---------------------------------------------------------------------------
# Wrapper
# ---------------------------------------------------------------------------

def _choose_tiles(S, B, D, itemsize, target_block_bytes):
    """Pick (ts, tb): sequence rows and batches per block."""
    # Lane axis: keep whole batches per block so the PE broadcast is a simple
    # lane tile.  Only split B when one full sequence row overflows the target
    # block and splitting keeps the lane width 128-aligned.
    tb = B
    row_bytes = B * D * itemsize
    if row_bytes > target_block_bytes and B > 1 and D % 128 == 0:
        tb = max(1, min(B, target_block_bytes // max(1, D * itemsize)))

    # Sublane axis: as many sequence rows as fit in ~target_block_bytes.
    blk_row_bytes = max(1, tb * D * itemsize)
    ts = max(1, target_block_bytes // blk_row_bytes)
    ts = min(ts, S)
    if S >= 16:
        # >= 2 grid steps so both v7x TensorCores get work on the parallel axis.
        ts = min(ts, pl.cdiv(S, 2))
    if ts >= 8:
        ts = (ts // 8) * 8          # sublane-aligned block rows
    elif S >= 8:
        ts = 8                      # minimum aligned block (may exceed target)
    else:
        ts = S                      # full extent (valid when == array dim)
    return ts, tb


def positional_encoding_forward(token_embedding, pos_encoding, dropout_p, *,
                                train=False, seed=0,
                                target_block_bytes=8 * 1024 * 1024):
    """token_embedding: (S, B, D); pos_encoding: (max_len, D) or (max_len, 1, D)."""
    S, B, D = token_embedding.shape
    max_len = pos_encoding.shape[0]
    assert S <= max_len, "sequence longer than the positional-encoding buffer"
    assert pos_encoding.size == max_len * D, "pos_encoding / dim_model mismatch"

    # Free row-major reshapes (no transpose, no copy): fold batch into lanes.
    x2 = token_embedding.reshape(S, B * D)
    pe2 = pos_encoding.reshape(max_len, D)

    itemsize = jnp.dtype(token_embedding.dtype).itemsize
    ts, tb = _choose_tiles(S, B, D, itemsize, target_block_bytes)
    grid = (pl.cdiv(S, ts), pl.cdiv(B, tb))

    # VMEM budget derived from the actual double-buffered footprint
    # (2 x in + 2 x out + 2 x pe blocks) plus margin; capped well under the
    # 128 MiB (v5e/v6e) physical VMEM and, with the default 8 MiB blocks,
    # ~33 MiB of buffers comfortably inside v7x's 64 MiB.
    x_blk_bytes = ts * tb * D * itemsize
    pe_blk_bytes = ts * D * jnp.dtype(pos_encoding.dtype).itemsize
    vmem_limit = 2 * (2 * x_blk_bytes + pe_blk_bytes) + (16 << 20)
    vmem_limit = int(max(32 << 20, min(vmem_limit, 96 << 20)))

    x_spec = pl.BlockSpec((ts, tb * D), lambda i, j: (i, j))
    pe_spec = pl.BlockSpec((ts, D), lambda i, j: (i, 0))
    out_spec = pl.BlockSpec((ts, tb * D), lambda i, j: (i, j))

    if train and float(dropout_p) > 0.0:
        kernel = functools.partial(_pe_add_dropout_kernel,
                                   batch_tile=tb, dropout_p=float(dropout_p))
        in_specs = [pl.BlockSpec(memory_space=pltpu.MemorySpace.SMEM),  # seed
                    x_spec, pe_spec]
        args = (jnp.asarray([seed], dtype=jnp.int32), x2, pe2)
    else:
        kernel = functools.partial(_pe_add_kernel, batch_tile=tb)
        in_specs = [x_spec, pe_spec]
        args = (x2, pe2)

    out2 = pl.pallas_call(
        kernel,
        out_shape=jax.ShapeDtypeStruct((S, B * D), token_embedding.dtype),
        grid=grid,
        in_specs=in_specs,
        out_specs=out_spec,
        compiler_params=pltpu.CompilerParams(
            dimension_semantics=("parallel", "parallel"),
            vmem_limit_bytes=vmem_limit,
        ),
    )(*args)

    return out2.reshape(S, B, D)


# ---------------------------------------------------------------------------
# Self-test
# ---------------------------------------------------------------------------

if __name__ == "__main__":
    # Small shapes consistent with the module's (S, N, E) forward.
    seq_len, batch, dim_model = 8, 2, 32
    max_len, dropout_p = 16, 0.1

    key = jax.random.PRNGKey(0)
    x = jax.random.normal(key, (seq_len, batch, dim_model), dtype=jnp.float32)

    # Built once, in the activation dtype ("register_buffer" equivalent).
    pos_encoding = make_pos_encoding(dim_model, max_len, dtype=x.dtype)  # (L, D)

    # Pure-JAX reference for the eval-mode forward (nn.Dropout is identity).
    ref = x + pos_encoding[:seq_len][:, None, :]

    out = positional_encoding_forward(x, pos_encoding, dropout_p, train=False)
    out = jax.block_until_ready(out)
    assert out.shape == (seq_len, batch, dim_model)
    assert jnp.allclose(out, ref, atol=1e-6, rtol=1e-6)

    # Train-mode dropout uses the TPU hardware PRNG (pltpu.prng_seed has no
    # CPU/interpret lowering), so only exercise it on a real TPU backend.
    if jax.default_backend() == "tpu":
        out_tr = jax.block_until_ready(
            positional_encoding_forward(x, pos_encoding, dropout_p,
                                        train=True, seed=123))
        assert out_tr.shape == (seq_len, batch, dim_model)
        assert bool(jnp.all(jnp.isfinite(out_tr)))
        # Inverted-dropout invariant: kept elements equal ref / (1 - p).
        kept = out_tr != 0
        assert bool(jnp.allclose(jnp.where(kept, out_tr, 0.0),
                                 jnp.where(kept, ref / (1.0 - dropout_p), 0.0),
                                 atol=1e-5, rtol=1e-5))

    print("KERNEL_OK")
</pallas_src>

<mosaic_0001>
module attributes {stable_mosaic.version = 11 : i64} {
  func.func @_pe_add_kernel(%arg0: i32, %arg1: i32, %arg2: memref<8x64xf32, #tpu.memory_space<vmem>>, %arg3: memref<8x32xf32, #tpu.memory_space<vmem>>, %arg4: memref<8x64xf32, #tpu.memory_space<vmem>>) attributes {dimension_semantics = [#tpu.dimension_semantics<parallel>, #tpu.dimension_semantics<parallel>], iteration_bounds = array<i64: 1, 1>, scalar_prefetch = 0 : i64, scratch_operands = 0 : i64, tpu.core_type = #tpu.core_type<tc>, window_params = [{transform_indices = @transform_0, window_bounds = array<i64: 8, 64>}, {transform_indices = @transform_1, window_bounds = array<i64: 8, 32>}, {transform_indices = @transform_2, window_bounds = array<i64: 8, 64>}]} {
    %c0 = arith.constant 0 : index
    %c0_0 = arith.constant 0 : index
    %0 = vector.load %arg3[%c0, %c0_0] : memref<8x32xf32, #tpu.memory_space<vmem>>, vector<8x32xf32>
    %1 = tpu.concatenate %0, %0 in 1 : vector<8x32xf32>, vector<8x32xf32> -> vector<8x64xf32>
    %c0_1 = arith.constant 0 : index
    %c0_2 = arith.constant 0 : index
    %2 = vector.load %arg2[%c0_1, %c0_2] : memref<8x64xf32, #tpu.memory_space<vmem>>, vector<8x64xf32>
    %3 = arith.addf %2, %1 : vector<8x64xf32>
    %c0_3 = arith.constant 0 : index
    %c0_4 = arith.constant 0 : index
    %4 = vector.load %arg4[%c0_3, %c0_4] : memref<8x64xf32, #tpu.memory_space<vmem>>, vector<8x64xf32>
    tpu.vector_store %arg4[%c0_3, %c0_4], %3 {strides = array<i32>} : memref<8x64xf32, #tpu.memory_space<vmem>>, vector<8x64xf32>,
    return
  }
  func.func @transform_0(%arg0: i32, %arg1: i32) -> (i32, i32) {
    %c0_i32 = arith.constant 0 : i32
    return %arg0, %arg1 : i32, i32
  }
  func.func @transform_1(%arg0: i32, %arg1: i32) -> (i32, i32) {
    %c0_i32 = arith.constant 0 : i32
    %c0_i32_0 = arith.constant 0 : i32
    return %arg0, %c0_i32 : i32, i32
  }
  func.func @transform_2(%arg0: i32, %arg1: i32) -> (i32, i32) {
    %c0_i32 = arith.constant 0 : i32
    return %arg0, %arg1 : i32, i32
  }
}

</mosaic_0001>

<bundles_post_ra>
// kernel: tpu_custom_call.1
= control target key start
LH: loop header
LB: loop body
LE: loop exit
PB: predicated region body
PF: predicated region fallthrough
CT: control target
= control target key end

     0   :  { %7 = vsyncpa [#allocation3], 0  ;;  %s179_s0 = inlined_call_operand.hbm [shape: f32[8,64], index: 0, kind: input, shape index: {}]   ;;  %s180_s1 = inlined_call_operand.hbm [shape: f32[16,32], index: 1, kind: input, shape index: {}]   ;;  %s181_s2 = inlined_call_operand.hbm [shape: f32[8,64], index: 2, kind: output, shape index: {}]  }
   0x1   :  { %8 = vsyncpa [#allocation6], 0 }
   0x2   :  { %9 = vsyncpa [#allocation4], 0  ;;  %s15_s11 = sshll.u32 %s179_s0, 4  ;;  %s151_s12 = smov [#allocation2]   ;;  %s16_s11 = int_to_ptr.hbm [resolvable:$true] %s15_s11 }
   0x3   :  { %s17_s13 = sshll.u32 %s151_s12, 4  ;;  %s26_s16 = sshll.u32 %s180_s1, 4  ;;  %s18_s13 = int_to_ptr.vmem [resolvable:$true] %s17_s13  ;;  %s27_s16 = int_to_ptr.hbm [resolvable:$true] %s26_s16 }
   0x4   :  { %20 = dma.hbm_to_vmem [thread:$0]  %s16_s11, 128, %s18_s13, [#allocation3]  }
   0x5   :  { %s152_s17 = smov [#allocation5]  }
   0x6   :  { %s28_s18 = sshll.u32 %s152_s17, 4  ;;  %s29_s18 = int_to_ptr.vmem [resolvable:$true] %s28_s18 }
   0x7   :  { %31 = dma.hbm_to_vmem [thread:$0]  %s27_s16, 128, %s29_s18, [#allocation6]  }
   0x8   :  { %145 = dma.done.wait [#allocation3], 128  }
   0x9   :  { %146 = vsyncadd [#allocation3], 4294967168 }
   0xa   :  { %147 = dma.done.wait [#allocation6], 128  }
   0xb   :  { %148 = vsyncadd [#allocation6], 4294967168  ;;  %v40_v0 = vld [vmem:[#allocation5] sm:$0xff]  ;;  %s153_s0 = smov 32   ;;  %vm45_vm0 = vcmask 261120   ;;  %v47_v1 = vld [vmem:[#allocation2] sm:$0xff] }
   0xc   :  { %42 = vrot.lane.b32.xlu0 %v40_v0, %s153_s0  ;;  %s154_s19 = smov [#allocation7]   ;;  %s58_s1 = sshll.u32 %s181_s2, 4  ;;  %vm49_vm1 = vcmask 523264   ;;  %s59_s1 = int_to_ptr.hbm [resolvable:$true] %s58_s1 }
   0xd   :  { %s56_s20 = sshll.u32 %s154_s19, 4  ;;  %s57_s20 = int_to_ptr.vmem [resolvable:$true] %s56_s20 }
  0x7e   :  { %v43_v2 = vpop.permute.xlu0 %42 }
  0x7f   :  { %v46_v3 = vsel %vm45_vm0, %v40_v0, %v43_v2 }
  0x80   :  { %v48_v4 = vadd.f32 %v47_v1, %v46_v3 }
  0x82   :  { %50 = vst.msk [vmem:[#allocation7] sm:$0xff] %vm49_vm1, %v48_v4 }
  0x83   :  { %61 = dma.vmem_to_hbm [thread:$0]  %s57_s20, 128, %s59_s1, [#allocation4]  }
  0x84   :  { %149 = dma.done.wait [#allocation4], 128  }
  0x85   :  { %150 = vsyncadd [#allocation4], 4294967168 }
  0x86   :  { %66 = vsyncpa [#allocation3], 1 }
  0x87   :  { %67 = vsyncpa [#allocation6], 1 }
  0x88   :  { %68 = vsyncpa [#allocation4], 1 }

</bundles_post_ra>
